<compile_context>
chip_gen: v5e
topology: v5e:2x2
jax: 0.10.0
libtpu: 0.0.40
codegen_flags: <defaults>
</compile_context>

<pallas_src>
import functools

import jax
import jax.numpy as jnp
from jax import lax
from jax.experimental import pallas as pl
from jax.experimental.pallas import tpu as pltpu

EPS = 1e-5  # torch default for BatchNorm2d / InstanceNorm2d

_TILE_BUDGET_BYTES = 2 << 20     # ~2 MiB per block buffer (safe on v5e/v6e/v7x)
_ONEPASS_BUDGET_BYTES = 2 << 20  # max per-buffer bytes for the fused IN path
_VMEM_LIMIT_BYTES = 32 << 20     # explicit scoped-VMEM limit for all calls
_STATS_LANE_CAP = 1024           # caps the unrolled 128-lane chunk loop (<= 8)
_NORM_LANE_CAP = 4096


def _round_up(x, m):
    return ((x + m - 1) // m) * m


def _row_step(rows, itemsize):
    """Sublane tile granularity (dtype-packing aware), or None -> full extent."""
    packed = 8 * max(1, 4 // itemsize)  # 8 (f32) / 16 (bf16) / 32 (i8, fp8)
    if rows % packed == 0:
        return packed
    if rows % 8 == 0:
        return 8
    return None


def _pick_tiles(rows, lanes, itemsize, lane_cap, budget=_TILE_BUDGET_BYTES):
    """(row_tile, lane_tile) dividing (rows, lanes); lanes is a 128-multiple."""
    t = max(128, min(lanes, (lane_cap // 128) * 128))
    while lanes % t:
        t -= 128
    step = _row_step(rows, itemsize)
    if step is None:
        return rows, t
    max_rows = max(step, budget // max(1, t * itemsize))
    tr = min((max_rows // step) * step, rows)
    while rows % tr:
        tr -= step
    return max(tr, step), t


# ---------------------------------------------------------------------------
# Kernels (shared by BatchNorm2d and InstanceNorm2d)
# ---------------------------------------------------------------------------
def _stats_kernel(x_ref, sum_ref, sumsq_ref):
    """Accumulate per-row sum / sum(x^2) into lane-wide (tr, 128) f32 partials."""
    @pl.when(pl.program_id(1) == 0)
    def _():
        sum_ref[...] = jnp.zeros_like(sum_ref)
        sumsq_ref[...] = jnp.zeros_like(sumsq_ref)

    s = sum_ref[...]
    q = sumsq_ref[...]
    n_chunks = x_ref.shape[1] // 128   # small: lane tile capped at 1024
    for k in range(n_chunks):          # static unroll, pure VPU adds (no XLU)
        xc = x_ref[:, k * 128:(k + 1) * 128].astype(jnp.float32)
        s = s + xc
        q = q + xc * xc
    sum_ref[...] = s
    sumsq_ref[...] = q


def _scale_shift_kernel(x_ref, p_ref, o_ref):
    """y = x * scale_row + shift_row; params packed as one (tr, 2) f32 block."""
    x = x_ref[...].astype(jnp.float32)
    o_ref[...] = (x * p_ref[:, 0:1] + p_ref[:, 1:2]).astype(o_ref.dtype)


def _instnorm_onepass_kernel(x_ref, o_ref, *, inv_count):
    """Fused per-row normalization when a whole row block fits in VMEM."""
    # Note: for f32 inputs the astype is a no-op (no extra VMEM temp); for
    # sub-32-bit dtypes the block budget already accounts for the f32 temp.
    x = x_ref[...].astype(jnp.float32)
    mean = jnp.sum(x, axis=1, keepdims=True) * inv_count
    meansq = jnp.sum(x * x, axis=1, keepdims=True) * inv_count
    var = jnp.maximum(meansq - mean * mean, 0.0)
    o_ref[...] = ((x - mean) * lax.rsqrt(var + EPS)).astype(o_ref.dtype)


# ---------------------------------------------------------------------------
# Shared pallas_call drivers
# ---------------------------------------------------------------------------
def _row_stats(x2p, rows, lanes_p, itemsize):
    tr, t = _pick_tiles(rows, lanes_p, itemsize, _STATS_LANE_CAP)
    cost = pl.CostEstimate(
        flops=3 * x2p.size,
        transcendentals=0,
        bytes_accessed=x2p.size * itemsize + 2 * rows * 128 * 4,
    )
    return pl.pallas_call(
        _stats_kernel,
        out_shape=(
            jax.ShapeDtypeStruct((rows, 128), jnp.float32),
            jax.ShapeDtypeStruct((rows, 128), jnp.float32),
        ),
        grid=(rows // tr, lanes_p // t),
        in_specs=[pl.BlockSpec((tr, t), lambda r, h: (r, h))],
        out_specs=(
            pl.BlockSpec((tr, 128), lambda r, h: (r, 0)),
            pl.BlockSpec((tr, 128), lambda r, h: (r, 0)),
        ),
        compiler_params=pltpu.CompilerParams(
            dimension_semantics=("parallel", "arbitrary"),  # rows shard on v7x megacore
            vmem_limit_bytes=_VMEM_LIMIT_BYTES,
        ),
        cost_estimate=cost,
    )(x2p)


def _apply_scale_shift(x2p, params, rows, lanes_p, itemsize, out_dtype):
    tr, t = _pick_tiles(rows, lanes_p, itemsize, _NORM_LANE_CAP)
    cost = pl.CostEstimate(
        flops=2 * x2p.size,
        transcendentals=0,
        bytes_accessed=2 * x2p.size * itemsize + rows * 2 * 4,
    )
    return pl.pallas_call(
        _scale_shift_kernel,
        out_shape=jax.ShapeDtypeStruct((rows, lanes_p), out_dtype),
        grid=(rows // tr, lanes_p // t),
        in_specs=[
            pl.BlockSpec((tr, t), lambda r, h: (r, h)),
            pl.BlockSpec((tr, 2), lambda r, h: (r, 0)),  # resident across lane tiles
        ],
        out_specs=pl.BlockSpec((tr, t), lambda r, h: (r, h)),
        compiler_params=pltpu.CompilerParams(
            dimension_semantics=("parallel", "parallel"),
            vmem_limit_bytes=_VMEM_LIMIT_BYTES,
        ),
        cost_estimate=cost,
    )(x2p, params)


# ---------------------------------------------------------------------------
# BatchNorm2d (affine=True, training-mode batch statistics), NCHW
# ---------------------------------------------------------------------------
@jax.jit
def batchnorm2d(x_nchw, gamma, beta):
    """nn.BatchNorm2d(affine=True) forward (training-mode batch statistics)."""
    # TODO(synk): running_mean/var tracking and eval-mode path are not implemented.
    N, C, H, W = x_nchw.shape
    HW = H * W
    HWp = _round_up(HW, 128)
    R = N * C
    itemsize = x_nchw.dtype.itemsize

    x2 = x_nchw.reshape(R, HW)  # free reshape, no transpose, no HBM pass
    if HWp != HW:
        x2 = jnp.pad(x2, ((0, 0), (0, HWp - HW)))  # zero pad -> lane-dense tiles

    # Pass 1: per-(n, c) lane-wide partial sums (single read of x).
    s_part, q_part = _row_stats(x2, R, HWp, itemsize)

    # Tiny O(N*C*128) fold in JAX: reduce over N + 128 lanes, then fold mean,
    # rsqrt(var), gamma, beta into one per-row (scale, shift) pair.
    s_c = jnp.sum(s_part.reshape(N, C, 128), axis=(0, 2))
    q_c = jnp.sum(q_part.reshape(N, C, 128), axis=(0, 2))
    count = float(N * HW)  # padded zeros contribute nothing to the sums
    mean = s_c / count
    # TODO(synk): E[x^2]-mean^2 in f32 can lose precision for large-mean inputs
    # (torch centers first); a shifted/Welford formulation would be more robust.
    var = jnp.maximum(q_c / count - mean * mean, 0.0)
    inv = lax.rsqrt(var + EPS)
    scale_c = gamma.astype(jnp.float32) * inv
    shift_c = beta.astype(jnp.float32) - mean * scale_c
    params = jnp.stack([jnp.tile(scale_c, N), jnp.tile(shift_c, N)], axis=1)  # (R, 2)

    # Pass 2: y = x*scale + shift, fully parallel over row/lane tiles.
    # TODO(synk): in a full net, fuse this pass into the consuming conv (or alias
    # y onto x via input_output_aliases when the caller donates) to save an HBM pass.
    y2 = _apply_scale_shift(x2, params, R, HWp, itemsize, x_nchw.dtype)
    if HWp != HW:
        y2 = y2[:, :HW]
    return y2.reshape(N, C, H, W)


# ---------------------------------------------------------------------------
# InstanceNorm2d (affine=False): per-(n, c) stats over H*W
# ---------------------------------------------------------------------------
@jax.jit
def instancenorm2d(x_nchw):
    """nn.InstanceNorm2d(affine=False) forward."""
    N, C, H, W = x_nchw.shape
    HW = H * W
    HWp = _round_up(HW, 128)
    R = N * C
    itemsize = x_nchw.dtype.itemsize

    x2 = x_nchw.reshape(R, HW)
    if HWp != HW:
        x2 = jnp.pad(x2, ((0, 0), (0, HWp - HW)))

    step = _row_step(R, itemsize)
    min_rows = R if step is None else step
    row_bytes = HWp * itemsize

    if min_rows * row_bytes <= _ONEPASS_BUDGET_BYTES:
        # Fused single pass (one read + one write of x); whole-row blocks are
        # bounded to ~2 MiB so double-buffered in+out stays well inside the
        # v5e 16 MiB / v7x 32 MiB scoped-VMEM defaults.
        if step is None:
            tr = R
        else:
            tr = min(max(step, (_ONEPASS_BUDGET_BYTES // row_bytes) // step * step), R)
            while R % tr:
                tr -= step
            tr = max(tr, step)
        cost = pl.CostEstimate(
            flops=5 * x2.size,
            transcendentals=R,
            bytes_accessed=2 * x2.size * itemsize,
        )
        y2 = pl.pallas_call(
            functools.partial(_instnorm_onepass_kernel, inv_count=1.0 / HW),
            out_shape=jax.ShapeDtypeStruct((R, HWp), x_nchw.dtype),
            grid=(R // tr,),
            in_specs=[pl.BlockSpec((tr, HWp), lambda r: (r, 0))],
            out_specs=pl.BlockSpec((tr, HWp), lambda r: (r, 0)),
            compiler_params=pltpu.CompilerParams(
                dimension_semantics=("parallel",),
                vmem_limit_bytes=_VMEM_LIMIT_BYTES,
            ),
            cost_estimate=cost,
        )(x2)
    else:
        # Large H*W: chunked two-pass path (stats accumulator + normalize) so
        # blocks stay bounded on v7x's smaller VMEM (extra read of x traded
        # for pipelined, VMEM-safe tiles).
        s_part, q_part = _row_stats(x2, R, HWp, itemsize)
        s_r = jnp.sum(s_part, axis=1)
        q_r = jnp.sum(q_part, axis=1)
        mean = s_r / float(HW)
        var = jnp.maximum(q_r / float(HW) - mean * mean, 0.0)
        scale_r = lax.rsqrt(var + EPS)
        shift_r = -mean * scale_r
        params = jnp.stack([scale_r, shift_r], axis=1)  # (R, 2)
        y2 = _apply_scale_shift(x2, params, R, HWp, itemsize, x_nchw.dtype)

    if HWp != HW:
        y2 = y2[:, :HW]
    return y2.reshape(N, C, H, W)


# ---------------------------------------------------------------------------
# NetworkBase equivalent
# ---------------------------------------------------------------------------
class NetworkBase:
    def __init__(self):
        self._name = "BaseNetwork"

    @property
    def name(self):
        return self._name

    def init_batchnorm_weights(self, key, num_features):
        # Mirrors _weights_init_fn for BatchNorm2d: weight ~ N(1.0, 0.02), bias = 0
        gamma = 1.0 + 0.02 * jax.random.normal(key, (num_features,), jnp.float32)
        beta = jnp.zeros((num_features,), jnp.float32)
        return gamma, beta

    def init_conv_weights(self, key, shape):
        # Mirrors _weights_init_fn for Conv*: weight ~ N(0.0, 0.02), bias = 0
        w = 0.02 * jax.random.normal(key, shape, jnp.float32)
        b = jnp.zeros((shape[0],), jnp.float32)
        return w, b

    def _get_norm_layer(self, norm_type="batch"):
        if norm_type == "batch":
            return functools.partial(batchnorm2d)            # affine=True
        elif norm_type == "instance":
            return lambda x, *unused: instancenorm2d(x)       # affine=False
        elif norm_type == "batchnorm2d":
            return batchnorm2d
        else:
            raise NotImplementedError(
                "normalization layer [%s] is not found" % norm_type
            )

    def forward(self, *inputs):
        # TODO(synk): NetworkBase.forward is abstract (raises NotImplementedError) in PyTorch.
        raise NotImplementedError


# ---------------------------------------------------------------------------
# Pure-JAX references for sanity checking
# ---------------------------------------------------------------------------
def _bn_ref(x, gamma, beta):
    m = jnp.mean(x, axis=(0, 2, 3), keepdims=True)
    v = jnp.mean(jnp.square(x - m), axis=(0, 2, 3), keepdims=True)
    return (x - m) * lax.rsqrt(v + EPS) * gamma[None, :, None, None] + beta[None, :, None, None]


def _in_ref(x):
    m = jnp.mean(x, axis=(2, 3), keepdims=True)
    v = jnp.mean(jnp.square(x - m), axis=(2, 3), keepdims=True)
    return (x - m) * lax.rsqrt(v + EPS)


if __name__ == "__main__":
    key = jax.random.PRNGKey(0)
    k1, k2, k3 = jax.random.split(key, 3)

    net = NetworkBase()
    bn_layer = net._get_norm_layer("batch")
    in_layer = net._get_norm_layer("instance")

    # Case 1: lane-friendly shape (H*W multiple of 128), NCHW as in PyTorch.
    N, C, H, W = 2, 4, 16, 16
    x = jax.random.normal(k1, (N, C, H, W), jnp.float32)
    gamma, beta = net.init_batchnorm_weights(k2, C)
    y_bn = jax.block_until_ready(bn_layer(x, gamma, beta))
    y_in = jax.block_until_ready(in_layer(x))
    assert y_bn.shape == (N, C, H, W) and y_in.shape == (N, C, H, W)
    assert jnp.allclose(y_bn, _bn_ref(x, gamma, beta), atol=1e-4, rtol=1e-4)
    assert jnp.allclose(y_in, _in_ref(x), atol=1e-4, rtol=1e-4)

    # Case 2: non-128-multiple H*W and non-multiple-of-8 rows (padded-lane path).
    N2, C2, H2, W2 = 2, 3, 10, 10
    x2 = 1.5 + jax.random.normal(k3, (N2, C2, H2, W2), jnp.float32)
    g2, b2 = net.init_batchnorm_weights(k2, C2)
    y_bn2 = jax.block_until_ready(bn_layer(x2, g2, b2))
    y_in2 = jax.block_until_ready(in_layer(x2))
    assert jnp.allclose(y_bn2, _bn_ref(x2, g2, b2), atol=1e-4, rtol=1e-4)
    assert jnp.allclose(y_in2, _in_ref(x2), atol=1e-4, rtol=1e-4)

    print("KERNEL_OK")
</pallas_src>

<mosaic_0001>
module attributes {stable_mosaic.version = 11 : i64} {
  func.func @_stats_kernel(%arg0: i32, %arg1: i32, %arg2: memref<8x256xf32, #tpu.memory_space<vmem>>, %arg3: memref<8x128xf32, #tpu.memory_space<vmem>>, %arg4: memref<8x128xf32, #tpu.memory_space<vmem>>) attributes {dimension_semantics = [#tpu.dimension_semantics<parallel>, #tpu.dimension_semantics<arbitrary>], iteration_bounds = array<i64: 1, 1>, scalar_prefetch = 0 : i64, scratch_operands = 0 : i64, tpu.core_type = #tpu.core_type<tc>, window_params = [{transform_indices = @transform_0, window_bounds = array<i64: 8, 256>}, {transform_indices = @transform_1, window_bounds = array<i64: 8, 128>}, {transform_indices = @transform_2, window_bounds = array<i64: 8, 128>}]} {
    %c0_i32 = arith.constant 0 : i32
    %0 = arith.cmpi eq, %arg1, %c0_i32 : i32
    %1 = arith.extui %0 : i1 to i32
    %c0_i32_0 = arith.constant 0 : i32
    %2 = arith.cmpi ne, %1, %c0_i32_0 : i32
    scf.if %2 {
      %cst = arith.constant 0.000000e+00 : f32
      %15 = vector.broadcast %cst : f32 to vector<8x128xf32>
      %c0_11 = arith.constant 0 : index
      %c0_12 = arith.constant 0 : index
      %16 = vector.load %arg3[%c0_11, %c0_12] : memref<8x128xf32, #tpu.memory_space<vmem>>, vector<8x128xf32>
      tpu.vector_store %arg3[%c0_11, %c0_12], %15 {strides = array<i32>} : memref<8x128xf32, #tpu.memory_space<vmem>>, vector<8x128xf32>,
      %cst_13 = arith.constant 0.000000e+00 : f32
      %17 = vector.broadcast %cst_13 : f32 to vector<8x128xf32>
      %c0_14 = arith.constant 0 : index
      %c0_15 = arith.constant 0 : index
      %18 = vector.load %arg4[%c0_14, %c0_15] : memref<8x128xf32, #tpu.memory_space<vmem>>, vector<8x128xf32>
      tpu.vector_store %arg4[%c0_14, %c0_15], %17 {strides = array<i32>} : memref<8x128xf32, #tpu.memory_space<vmem>>, vector<8x128xf32>,
    } else {
    }
    %c0 = arith.constant 0 : index
    %c0_1 = arith.constant 0 : index
    %3 = vector.load %arg3[%c0, %c0_1] : memref<8x128xf32, #tpu.memory_space<vmem>>, vector<8x128xf32>
    %c0_2 = arith.constant 0 : index
    %c0_3 = arith.constant 0 : index
    %4 = vector.load %arg4[%c0_2, %c0_3] : memref<8x128xf32, #tpu.memory_space<vmem>>, vector<8x128xf32>
    %c0_4 = arith.constant 0 : index
    %c0_5 = arith.constant 0 : index
    %5 = vector.load %arg2[%c0_4, %c0_5] : memref<8x256xf32, #tpu.memory_space<vmem>>, vector<8x128xf32>
    %6 = arith.addf %3, %5 : vector<8x128xf32>
    %7 = arith.mulf %5, %5 : vector<8x128xf32>
    %8 = arith.addf %4, %7 : vector<8x128xf32>
    %c0_6 = arith.constant 0 : index
    %c128 = arith.constant 128 : index
    %9 = vector.load %arg2[%c0_6, %c128] : memref<8x256xf32, #tpu.memory_space<vmem>>, vector<8x128xf32>
    %10 = arith.addf %6, %9 : vector<8x128xf32>
    %11 = arith.mulf %9, %9 : vector<8x128xf32>
    %12 = arith.addf %8, %11 : vector<8x128xf32>
    %c0_7 = arith.constant 0 : index
    %c0_8 = arith.constant 0 : index
    %13 = vector.load %arg3[%c0_7, %c0_8] : memref<8x128xf32, #tpu.memory_space<vmem>>, vector<8x128xf32>
    tpu.vector_store %arg3[%c0_7, %c0_8], %10 {strides = array<i32>} : memref<8x128xf32, #tpu.memory_space<vmem>>, vector<8x128xf32>,
    %c0_9 = arith.constant 0 : index
    %c0_10 = arith.constant 0 : index
    %14 = vector.load %arg4[%c0_9, %c0_10] : memref<8x128xf32, #tpu.memory_space<vmem>>, vector<8x128xf32>
    tpu.vector_store %arg4[%c0_9, %c0_10], %12 {strides = array<i32>} : memref<8x128xf32, #tpu.memory_space<vmem>>, vector<8x128xf32>,
    return
  }
  func.func @transform_0(%arg0: i32, %arg1: i32) -> (i32, i32) {
    %c0_i32 = arith.constant 0 : i32
    return %arg0, %arg1 : i32, i32
  }
  func.func @transform_1(%arg0: i32, %arg1: i32) -> (i32, i32) {
    %c0_i32 = arith.constant 0 : i32
    %c0_i32_0 = arith.constant 0 : i32
    return %arg0, %c0_i32 : i32, i32
  }
  func.func @transform_2(%arg0: i32, %arg1: i32) -> (i32, i32) {
    %c0_i32 = arith.constant 0 : i32
    %c0_i32_0 = arith.constant 0 : i32
    return %arg0, %c0_i32 : i32, i32
  }
}

module attributes {stable_mosaic.version = 11 : i64} {
  func.func @_scale_shift_kernel(%arg0: i32, %arg1: i32, %arg2: memref<8x256xf32, #tpu.memory_space<vmem>>, %arg3: memref<8x2xf32, #tpu.memory_space<vmem>>, %arg4: memref<8x256xf32, #tpu.memory_space<vmem>>) attributes {dimension_semantics = [#tpu.dimension_semantics<parallel>, #tpu.dimension_semantics<parallel>], iteration_bounds = array<i64: 1, 1>, scalar_prefetch = 0 : i64, scratch_operands = 0 : i64, tpu.core_type = #tpu.core_type<tc>, window_params = [{transform_indices = @transform_0, window_bounds = array<i64: 8, 256>}, {transform_indices = @transform_1, window_bounds = array<i64: 8, 2>}, {transform_indices = @transform_2, window_bounds = array<i64: 8, 256>}]} {
    %c0 = arith.constant 0 : index
    %c0_0 = arith.constant 0 : index
    %0 = vector.load %arg2[%c0, %c0_0] : memref<8x256xf32, #tpu.memory_space<vmem>>, vector<8x256xf32>
    %c0_1 = arith.constant 0 : index
    %c0_2 = arith.constant 0 : index
    %1 = vector.load %arg3[%c0_1, %c0_2] : memref<8x2xf32, #tpu.memory_space<vmem>>, vector<8x1xf32>
    %2 = vector.broadcast %1 : vector<8x1xf32> to vector<8x256xf32>
    %3 = arith.mulf %0, %2 : vector<8x256xf32>
    %c0_3 = arith.constant 0 : index
    %c1 = arith.constant 1 : index
    %4 = vector.load %arg3[%c0_3, %c1] : memref<8x2xf32, #tpu.memory_space<vmem>>, vector<8x1xf32>
    %5 = vector.broadcast %4 : vector<8x1xf32> to vector<8x256xf32>
    %6 = arith.addf %3, %5 : vector<8x256xf32>
    %c0_4 = arith.constant 0 : index
    %c0_5 = arith.constant 0 : index
    %7 = vector.load %arg4[%c0_4, %c0_5] : memref<8x256xf32, #tpu.memory_space<vmem>>, vector<8x256xf32>
    tpu.vector_store %arg4[%c0_4, %c0_5], %6 {strides = array<i32>} : memref<8x256xf32, #tpu.memory_space<vmem>>, vector<8x256xf32>,
    return
  }
  func.func @transform_0(%arg0: i32, %arg1: i32) -> (i32, i32) {
    %c0_i32 = arith.constant 0 : i32
    return %arg0, %arg1 : i32, i32
  }
  func.func @transform_1(%arg0: i32, %arg1: i32) -> (i32, i32) {
    %c0_i32 = arith.constant 0 : i32
    %c0_i32_0 = arith.constant 0 : i32
    return %arg0, %c0_i32 : i32, i32
  }
  func.func @transform_2(%arg0: i32, %arg1: i32) -> (i32, i32) {
    %c0_i32 = arith.constant 0 : i32
    return %arg0, %arg1 : i32, i32
  }
}

</mosaic_0001>

<bundles_post_ra>
// kernel: tile.17
= control target key start
LH: loop header
LB: loop body
LE: loop exit
PB: predicated region body
PF: predicated region fallthrough
CT: control target
= control target key end

     0   :  { %s22_s0 = inlined_call_operand.vmem [shape: f32[4], index: 0, kind: input, shape index: {}]   ;;  %s23_s1 = inlined_call_operand.vmem [shape: f32[2,4], index: 1, kind: output, shape index: {}]  }
   0x1   :  { %v4_v0 = vld [vmem:[%s22_s0] ss:$0 sm:$0xff] }
   0x2   :  { %5 = vst [vmem:[%s23_s1] sm:$0x3] %v4_v0 }

// kernel: tile.19
= control target key start
LH: loop header
LB: loop body
LE: loop exit
PB: predicated region body
PF: predicated region fallthrough
CT: control target
= control target key end

     0   :  { %vm7_vm0 = vcmask 31744   ;;  %vm13_vm1 = vcmask 64544   ;;  %s39_s0 = inlined_call_operand.vmem [shape: f32[2,4], index: 0, kind: input, shape index: {}]   ;;  %s40_s1 = inlined_call_operand.vmem [shape: f32[8,1], index: 1, kind: output, shape index: {}]  }
   0x1   :  { %v4_v0 = vld [vmem:[%s39_s0] sm:$0x3]  ;;  %s22_s0 = smov 4  }
   0x2   :  { %5 = vst [vmem:[#allocation1] sm:$0x3] %v4_v0 }
   0x9   :  { %v10_v1 = vld [vmem:[#allocation1 + $0x1] sm:$0x1]   ;;  %v6_v2 = vld [vmem:[#allocation1] sm:$0x1]  }
   0xa   :  { %11 = vrot.lane.b32.xlu0 %v10_v1, %s22_s0  ;;  %8 = vst.msk [vmem:[#allocation0] sm:$0x1] %vm7_vm0, %v6_v2  }
  0x7c   :  { %v12_v3 = vpop.permute.xlu0 %11  }
  0x7d   :  { %14 = vst.msk [vmem:[#allocation0] sm:$0x1] %vm13_vm1, %v12_v3  }
  0x84   :  { %v17_v4 = vld [vmem:[#allocation0] sm:$0x1] }
  0x85   :  { %20 = vst [vmem:[%s40_s1] sm:$0x1] %v17_v4 }

// kernel: batchnorm2d.2
= control target key start
LH: loop header
LB: loop body
LE: loop exit
PB: predicated region body
PF: predicated region fallthrough
CT: control target
= control target key end

     0   :  { %s64_s0 = inlined_call_operand.vmem [shape: f32[8,256], index: 0, kind: input, shape index: {}]   ;;  %s65_s1 = inlined_call_operand.vmem [shape: f32[8,128], index: 1, kind: output, shape index: {0}]   ;;  %s66_s2 = inlined_call_operand.vmem [shape: f32[8,128], index: 2, kind: output, shape index: {1}]  }
   0x1   :  { %v18_v0 = vld [vmem:[%s64_s0] sm:$0xff]  ;;  %v22_v1 = vld [vmem:[%s64_s0 + $0x8] sm:$0xff] }
   0x2   :  { %v20_v2 = vmul.f32 %v18_v0, %v18_v0  ;;  %v24_v3 = vmul.f32 %v22_v1, %v22_v1  ;;  %v23_v4 = vadd.f32 %v22_v1, %v18_v0 }
   0x4   :  { %26 = vst [vmem:[%s65_s1] sm:$0xff] %v23_v4  ;;  %v25_v5 = vadd.f32 %v24_v3, %v20_v2 }
   0x6   :  { %27 = vst [vmem:[%s66_s2] sm:$0xff] %v25_v5 }

// kernel: batchnorm2d.3
= control target key start
LH: loop header
LB: loop body
LE: loop exit
PB: predicated region body
PF: predicated region fallthrough
CT: control target
= control target key end

     0   :  { %v37_v0 = vmov 0   ;;  %v38_v2 = vmov 1   ;;  %s69_s1 = inlined_call_operand.vmem [shape: f32[8,2], index: 1, kind: input, shape index: {}]   ;;  %s70_s0 = inlined_call_operand.vmem [shape: f32[8,256], index: 0, kind: input, shape index: {}]   ;;  %s71_s2 = inlined_call_operand.vmem [shape: f32[8,256], index: 2, kind: output, shape index: {}]  }
   0x1   :  { %35 = vset.pattern.permute.xlu0 %v37_v0  ;;  %v13_v1 = vld [vmem:[%s69_s1] sm:$0xff]  ;;  %v12_v5 = vld [vmem:[%s70_s0 + $0x8] sm:$0xff] }
   0x2   :  { %16 = vperm.xlu0 %35, %v13_v1   ;;  %v11_v4 = vld [vmem:[%s70_s0] sm:$0xff] }
   0xa   :  { %36 = vset.pattern.permute.xlu0 %v38_v2 }
   0xb   :  { %22 = vperm.xlu0 %36, %v13_v1  }
  0x74   :  { %v17_v3 = vpop.permute.xlu0 %16 }
  0x75   :  { %v19_v6 = vmul.f32 %v17_v3, %v11_v4  ;;  %v20_v7 = vmul.f32 %v17_v3, %v12_v5 }
  0x7d   :  { %v23_v8 = vpop.permute.xlu0 %22 }
  0x7e   :  { %v25_v9 = vadd.f32 %v23_v8, %v19_v6  ;;  %v26_v10 = vadd.f32 %v23_v8, %v20_v7 }
  0x80   :  { %27 = vst [vmem:[%s71_s2] sm:$0xff] %v25_v9 }
  0x81   :  { %28 = vst [vmem:[%s71_s2 + $0x8] sm:$0xff] %v26_v10 }

</bundles_post_ra>
